<compile_context>
chip_gen: v5e
topology: v5e:2x2
jax: 0.10.0
libtpu: 0.0.40
codegen_flags: <defaults>
</compile_context>

<pallas_src>
import functools

import jax
import jax.numpy as jnp
import numpy as np
from jax import lax
from jax.experimental import pallas as pl
from jax.experimental.pallas import tpu as pltpu

_NEG_FILL = -1e30  # bias for padded vocab columns: exp() underflows to exactly 0


def _mlp_predictor_kernel(hid_ref, wb_ref, bb_ref, ws_ref, bs_ref, tgt_ref, out_ref,
                          h_sc, m_sc, l_sc, pick_sc,
                          *, pad_id: int, div_by_word: bool, tile_v: int):
    """One vocab block per grid step.

    hid_ref : [L, Bp, E]        bf16  (encoder hidden, batch padded to 8)
    wb_ref  : [L, E, Fout]      bf16  (bridger weight, pre-transposed per layer)
    bb_ref  : [1, Fout]         f32
    ws_ref  : [Fout, tile_v]    bf16  (scorer weight block, pre-transposed)
    bs_ref  : [1, tile_v]       f32   (scorer bias block; padded cols = -1e30)
    tgt_ref : [Bp, T]           int32 (padded rows filled with pad_id)
    out_ref : [1, 1]            f32   (SMEM scalar loss, written on last step)
    scratch : h [Bp, Fout] f32, m/l/pick [Bp, 1] f32
    """
    j = pl.program_id(0)

    @pl.when(j == 0)
    def _init():
        num_layers = hid_ref.shape[0]
        acc = jnp.dot(hid_ref[0], wb_ref[0], preferred_element_type=jnp.float32)
        for li in range(1, num_layers):
            acc = acc + jnp.dot(hid_ref[li], wb_ref[li],
                                preferred_element_type=jnp.float32)
        h_sc[...] = acc + bb_ref[...]                       # bridger output, f32
        m_sc[...] = jnp.full(m_sc.shape, -jnp.inf, jnp.float32)
        l_sc[...] = jnp.zeros(l_sc.shape, jnp.float32)
        pick_sc[...] = jnp.zeros(pick_sc.shape, jnp.float32)

    # Scorer logits for this vocab block (bf16 MXU inputs, f32 accumulation).
    logits = jnp.dot(h_sc[...].astype(jnp.bfloat16), ws_ref[...],
                     preferred_element_type=jnp.float32) + bs_ref[...]   # [Bp, TV]

    # Online log-sum-exp statistics.
    m_prev = m_sc[...]
    m_new = jnp.maximum(m_prev, jnp.max(logits, axis=-1, keepdims=True))
    alpha = jnp.exp(m_prev - m_new)
    l_sc[...] = alpha * l_sc[...] + jnp.sum(jnp.exp(logits - m_new),
                                            axis=-1, keepdims=True)
    m_sc[...] = m_new

    # Accumulate raw picked logits for every valid target token falling in this
    # vocab block. Working set per token is [Bp, TV] (no [B, T, V] intermediate).
    tgt = tgt_ref[...]                                       # [Bp, T] int32
    num_tok = tgt.shape[-1]
    vocab_ids = j * tile_v + lax.broadcasted_iota(jnp.int32, logits.shape, 1)
    picked = jnp.zeros(pick_sc.shape, jnp.float32)
    for t in range(num_tok):                                 # static unroll (T small)
        tok = tgt[:, t:t + 1]                                # [Bp, 1]
        hit = jnp.logical_and(vocab_ids == tok, tok != pad_id)
        picked = picked + jnp.sum(hit.astype(jnp.float32) * logits,
                                  axis=-1, keepdims=True)
    pick_sc[...] = pick_sc[...] + picked

    @pl.when(j == pl.num_programs(0) - 1)
    def _finalize():
        lse = m_sc[...] + jnp.log(l_sc[...])                 # [Bp, 1] logsumexp
        n_valid = jnp.sum((tgt_ref[...] != pad_id).astype(jnp.float32),
                          axis=-1, keepdims=True)            # [Bp, 1]
        # sum_t -logp[tgt] over valid t  ==  n_valid*lse - sum_t logits[tgt]
        loss_row = n_valid * lse - pick_sc[...]
        if div_by_word:
            loss_row = loss_row * pl.reciprocal(n_valid + 1e-9, approx=True)
        out_ref[0, 0] = jnp.sum(loss_row)


def prepare_params(params, *, enc_num_layers, enc_dim, tile_v=512):
    """One-time parameter prep: pre-transpose, vocab-pad and cast for the kernel."""
    assert tile_v % 128 == 0
    wb = jnp.asarray(params["w_bridge"], jnp.float32)        # [Fout, Fin]
    bb = jnp.asarray(params["b_bridge"], jnp.float32)        # [Fout]
    ws = jnp.asarray(params["w_score"], jnp.float32)         # [V, Fout]
    bs = jnp.asarray(params["b_score"], jnp.float32)         # [V]
    fout, fin = wb.shape
    assert fin == enc_num_layers * enc_dim
    vocab = ws.shape[0]
    v_pad = pl.cdiv(vocab, tile_v) * tile_v

    # Bridger weight as [L, E, Fout] so hidden is consumed in its native
    # [L, B, E] layout: h = sum_l hidden[l] @ wb[l]  (== flatten @ W.T).
    wb_lef = wb.reshape(fout, enc_num_layers, enc_dim).transpose(1, 2, 0)

    ws_t = jnp.pad(ws.T, ((0, 0), (0, v_pad - vocab)))       # [Fout, Vp], zero pad
    bs_p = jnp.pad(bs, (0, v_pad - vocab), constant_values=_NEG_FILL)

    return {
        "wb": wb_lef.astype(jnp.bfloat16),
        "bb": bb.reshape(1, fout),
        "ws": ws_t.astype(jnp.bfloat16),
        "bs": bs_p.reshape(1, v_pad),
        "fin": fin, "fout": fout, "vocab": vocab, "v_pad": v_pad, "tile_v": tile_v,
        "enc_num_layers": enc_num_layers, "enc_dim": enc_dim,
    }


def mlp_predictor_forward(hidden, tgt_var, prep, *, pad_id, div_by_word=False):
    """hidden: [L, B, E] f32, tgt_var: [B, T] int -> scalar f32 loss."""
    num_layers, batch, enc_dim = hidden.shape
    assert num_layers == prep["enc_num_layers"] and enc_dim == prep["enc_dim"]
    seq = tgt_var.shape[1]
    b_pad = pl.cdiv(batch, 8) * 8                            # sublane-align M dim

    hid = jnp.pad(hidden, ((0, 0), (0, b_pad - batch), (0, 0))).astype(jnp.bfloat16)
    tgt = jnp.pad(tgt_var.astype(jnp.int32), ((0, b_pad - batch), (0, 0)),
                  constant_values=pad_id)                    # pad rows -> zero loss

    fout, v_pad, tile_v = prep["fout"], prep["v_pad"], prep["tile_v"]
    num_vb = v_pad // tile_v

    kernel = functools.partial(_mlp_predictor_kernel, pad_id=int(pad_id),
                               div_by_word=bool(div_by_word), tile_v=tile_v)

    cost = pl.CostEstimate(
        flops=2 * b_pad * (prep["fin"] * fout + fout * v_pad),
        transcendentals=b_pad * (v_pad + num_vb),
        bytes_accessed=(hid.size * 2 + prep["wb"].size * 2 + prep["bb"].size * 4
                        + prep["ws"].size * 2 + prep["bs"].size * 4
                        + tgt.size * 4 + 4),
    )

    grid_spec = pltpu.PrefetchScalarGridSpec(
        num_scalar_prefetch=0,
        grid=(num_vb,),
        in_specs=[
            pl.BlockSpec((num_layers, b_pad, enc_dim), lambda j: (0, 0, 0)),  # hidden
            pl.BlockSpec((num_layers, enc_dim, fout), lambda j: (0, 0, 0)),   # Wb
            pl.BlockSpec((1, fout), lambda j: (0, 0)),                        # bb
            pl.BlockSpec((fout, tile_v), lambda j: (0, j)),                   # Ws blk
            pl.BlockSpec((1, tile_v), lambda j: (0, j)),                      # bs blk
            pl.BlockSpec((b_pad, seq), lambda j: (0, 0)),                     # targets
        ],
        out_specs=pl.BlockSpec(memory_space=pltpu.MemorySpace.SMEM),
        scratch_shapes=[
            pltpu.VMEM((b_pad, fout), jnp.float32),   # bridger output h
            pltpu.VMEM((b_pad, 1), jnp.float32),      # running max
            pltpu.VMEM((b_pad, 1), jnp.float32),      # running sum-exp
            pltpu.VMEM((b_pad, 1), jnp.float32),      # accumulated picked logits
        ],
    )

    out = pl.pallas_call(
        kernel,
        out_shape=jax.ShapeDtypeStruct((1, 1), jnp.float32),
        grid_spec=grid_spec,
        compiler_params=pltpu.CompilerParams(dimension_semantics=("arbitrary",)),
        cost_estimate=cost,
    )(hid, prep["wb"], prep["bb"], prep["ws"], prep["bs"], tgt)
    return out[0, 0]


def _reference_forward(hidden, tgt_var, params, *, pad_id, div_by_word=False,
                       cast_bf16=False):
    """Pure-JAX reference. cast_bf16=True mirrors the kernel's matmul dtypes."""
    L, B, E = hidden.shape
    x = jnp.transpose(hidden, (1, 0, 2)).reshape(B, -1)
    wb, ws = params["w_bridge"], params["w_score"]
    if cast_bf16:
        x, wb, ws = (a.astype(jnp.bfloat16) for a in (x, wb, ws))
    h = jnp.dot(x, wb.T, preferred_element_type=jnp.float32) + params["b_bridge"]
    if cast_bf16:
        h = h.astype(jnp.bfloat16)
    logits = jnp.dot(h, ws.T, preferred_element_type=jnp.float32) + params["b_score"]
    logp = jax.nn.log_softmax(logits, axis=-1)
    picked = jnp.take_along_axis(logp, tgt_var, axis=-1)     # [B, T]
    valid = tgt_var != pad_id
    loss = jnp.where(valid, -picked, 0.0)
    if div_by_word:
        loss = loss / (1e-9 + jnp.sum(valid.astype(jnp.float32), -1, keepdims=True))
    return jnp.sum(loss)


if __name__ == "__main__":
    batch = 2
    enc_num_layers, enc_dim = 2, 32
    dec_num_layers, dec_hidden = 2, 32
    vocab_size = 300            # not a tile multiple -> exercises vocab padding
    seq_len = 8
    pad_id = 0
    tile_v = 128                # multiple of 128 -> 3 vocab grid steps for V=300

    fin = enc_num_layers * enc_dim
    fout = dec_num_layers * dec_hidden

    key = jax.random.PRNGKey(0)
    k_h, k_wb, k_bb, k_ws, k_bs, k_tgt = jax.random.split(key, 6)

    hidden = jax.random.normal(k_h, (enc_num_layers, batch, enc_dim), jnp.float32)
    params = {
        "w_bridge": 0.05 * jax.random.normal(k_wb, (fout, fin), jnp.float32),
        "b_bridge": 0.01 * jax.random.normal(k_bb, (fout,), jnp.float32),
        "w_score": 0.05 * jax.random.normal(k_ws, (vocab_size, fout), jnp.float32),
        "b_score": 0.01 * jax.random.normal(k_bs, (vocab_size,), jnp.float32),
    }
    tgt_var = jax.random.randint(k_tgt, (batch, seq_len), 1, vocab_size, jnp.int32)
    # Inject some padding so ignore_index is exercised.
    tgt_var = tgt_var.at[0, -2:].set(pad_id).at[1, -1:].set(pad_id)

    prep = prepare_params(params, enc_num_layers=enc_num_layers, enc_dim=enc_dim,
                          tile_v=tile_v)

    # Path 1: no per-word normalization (matches the original test).
    loss = mlp_predictor_forward(hidden, tgt_var, prep, pad_id=pad_id,
                                 div_by_word=False)
    loss = jax.block_until_ready(loss)
    ref_bf16 = _reference_forward(hidden, tgt_var, params, pad_id=pad_id,
                                  div_by_word=False, cast_bf16=True)
    ref_f32 = _reference_forward(hidden, tgt_var, params, pad_id=pad_id,
                                 div_by_word=False, cast_bf16=False)
    np.testing.assert_allclose(np.asarray(loss), np.asarray(ref_bf16),
                               rtol=2e-3, atol=2e-3)
    np.testing.assert_allclose(np.asarray(loss), np.asarray(ref_f32),
                               rtol=3e-2, atol=3e-2)

    # Path 2: div_by_word=True (uses the EUP approximate reciprocal).
    loss_div = mlp_predictor_forward(hidden, tgt_var, prep, pad_id=pad_id,
                                     div_by_word=True)
    loss_div = jax.block_until_ready(loss_div)
    ref_div = _reference_forward(hidden, tgt_var, params, pad_id=pad_id,
                                 div_by_word=True, cast_bf16=True)
    np.testing.assert_allclose(np.asarray(loss_div), np.asarray(ref_div),
                               rtol=2e-2, atol=2e-2)

    print("KERNEL_OK")
</pallas_src>

<mosaic_0001>
module attributes {stable_mosaic.version = 11 : i64} {
  func.func @_mlp_predictor_kernel(%arg0: i32, %arg1: memref<2x8x32xbf16, #tpu.memory_space<vmem>>, %arg2: memref<2x32x64xbf16, #tpu.memory_space<vmem>>, %arg3: memref<1x64xf32, #tpu.memory_space<vmem>>, %arg4: memref<64x128xbf16, #tpu.memory_space<vmem>>, %arg5: memref<1x128xf32, #tpu.memory_space<vmem>>, %arg6: memref<8x8xi32, #tpu.memory_space<vmem>>, %arg7: memref<1x1xf32, #tpu.memory_space<smem>>, %arg8: memref<8x64xf32, #tpu.memory_space<vmem>>, %arg9: memref<8x1xf32, #tpu.memory_space<vmem>>, %arg10: memref<8x1xf32, #tpu.memory_space<vmem>>, %arg11: memref<8x1xf32, #tpu.memory_space<vmem>>) attributes {dimension_semantics = [#tpu.dimension_semantics<arbitrary>], iteration_bounds = array<i64: 3>, scalar_prefetch = 0 : i64, scratch_operands = 4 : i64, tpu.core_type = #tpu.core_type<tc>, window_params = [{pipeline_mode = #tpu.pipeline_mode<synchronous>, transform_indices = @transform_0, window_bounds = array<i64: 2, 8, 32>}, {pipeline_mode = #tpu.pipeline_mode<synchronous>, transform_indices = @transform_1, window_bounds = array<i64: 2, 32, 64>}, {pipeline_mode = #tpu.pipeline_mode<synchronous>, transform_indices = @transform_2, window_bounds = array<i64: 1, 64>}, {transform_indices = @transform_3, window_bounds = array<i64: 64, 128>}, {transform_indices = @transform_4, window_bounds = array<i64: 1, 128>}, {pipeline_mode = #tpu.pipeline_mode<synchronous>, transform_indices = @transform_5, window_bounds = array<i64: 8, 8>}, {transform_indices = @transform_6, window_bounds = array<i64: 1, 1>}]} {
    %c0_i32 = arith.constant 0 : i32
    %0 = arith.cmpi eq, %arg0, %c0_i32 : i32
    %1 = arith.extui %0 : i1 to i32
    %c0_i32_0 = arith.constant 0 : i32
    %2 = arith.cmpi ne, %1, %c0_i32_0 : i32
    scf.if %2 {
      %c0_40 = arith.constant 0 : index
      %c0_41 = arith.constant 0 : index
      %c0_42 = arith.constant 0 : index
      %142 = vector.load %arg1[%c0_40, %c0_41, %c0_42] : memref<2x8x32xbf16, #tpu.memory_space<vmem>>, vector<1x8x32xbf16>
      %143 = vector.shape_cast %142 : vector<1x8x32xbf16> to vector<8x32xbf16>
      %c0_43 = arith.constant 0 : index
      %c0_44 = arith.constant 0 : index
      %c0_45 = arith.constant 0 : index
      %144 = vector.load %arg2[%c0_43, %c0_44, %c0_45] : memref<2x32x64xbf16, #tpu.memory_space<vmem>>, vector<1x32x64xbf16>
      %145 = vector.shape_cast %144 : vector<1x32x64xbf16> to vector<32x64xbf16>
      %cst_46 = arith.constant dense<0.000000e+00> : vector<8x64xf32>
      %146 = tpu.matmul %143, %145, %cst_46 {dimension_numbers = #tpu.dot_dimension_numbers<[1], [0], [0], [1], [0, 0, 1, 1], [], []>} : vector<8x32xbf16>, vector<32x64xbf16>, vector<8x64xf32> -> vector<8x64xf32>
      %c1 = arith.constant 1 : index
      %c0_47 = arith.constant 0 : index
      %c0_48 = arith.constant 0 : index
      %147 = vector.load %arg1[%c1, %c0_47, %c0_48] : memref<2x8x32xbf16, #tpu.memory_space<vmem>>, vector<1x8x32xbf16>
      %148 = vector.shape_cast %147 : vector<1x8x32xbf16> to vector<8x32xbf16>
      %c1_49 = arith.constant 1 : index
      %c0_50 = arith.constant 0 : index
      %c0_51 = arith.constant 0 : index
      %149 = vector.load %arg2[%c1_49, %c0_50, %c0_51] : memref<2x32x64xbf16, #tpu.memory_space<vmem>>, vector<1x32x64xbf16>
      %150 = vector.shape_cast %149 : vector<1x32x64xbf16> to vector<32x64xbf16>
      %cst_52 = arith.constant dense<0.000000e+00> : vector<8x64xf32>
      %151 = tpu.matmul %148, %150, %cst_52 {dimension_numbers = #tpu.dot_dimension_numbers<[1], [0], [0], [1], [0, 0, 1, 1], [], []>} : vector<8x32xbf16>, vector<32x64xbf16>, vector<8x64xf32> -> vector<8x64xf32>
      %152 = arith.addf %146, %151 : vector<8x64xf32>
      %c0_53 = arith.constant 0 : index
      %c0_54 = arith.constant 0 : index
      %153 = vector.load %arg3[%c0_53, %c0_54] : memref<1x64xf32, #tpu.memory_space<vmem>>, vector<1x64xf32>
      %154 = vector.broadcast %153 : vector<1x64xf32> to vector<8x64xf32>
      %155 = arith.addf %152, %154 : vector<8x64xf32>
      %c0_55 = arith.constant 0 : index
      %c0_56 = arith.constant 0 : index
      %156 = vector.load %arg8[%c0_55, %c0_56] : memref<8x64xf32, #tpu.memory_space<vmem>>, vector<8x64xf32>
      tpu.vector_store %arg8[%c0_55, %c0_56], %155 {strides = array<i32>} : memref<8x64xf32, #tpu.memory_space<vmem>>, vector<8x64xf32>,
      %cst_57 = arith.constant 0xFF800000 : f32
      %157 = vector.broadcast %cst_57 : f32 to vector<8x1xf32>
      %c0_58 = arith.constant 0 : index
      %c0_59 = arith.constant 0 : index
      %158 = vector.load %arg9[%c0_58, %c0_59] : memref<8x1xf32, #tpu.memory_space<vmem>>, vector<8x1xf32>
      tpu.vector_store %arg9[%c0_58, %c0_59], %157 {strides = array<i32>} : memref<8x1xf32, #tpu.memory_space<vmem>>, vector<8x1xf32>,
      %cst_60 = arith.constant 0.000000e+00 : f32
      %159 = vector.broadcast %cst_60 : f32 to vector<8x1xf32>
      %c0_61 = arith.constant 0 : index
      %c0_62 = arith.constant 0 : index
      %160 = vector.load %arg10[%c0_61, %c0_62] : memref<8x1xf32, #tpu.memory_space<vmem>>, vector<8x1xf32>
      tpu.vector_store %arg10[%c0_61, %c0_62], %159 {strides = array<i32>} : memref<8x1xf32, #tpu.memory_space<vmem>>, vector<8x1xf32>,
      %cst_63 = arith.constant 0.000000e+00 : f32
      %161 = vector.broadcast %cst_63 : f32 to vector<8x1xf32>
      %c0_64 = arith.constant 0 : index
      %c0_65 = arith.constant 0 : index
      %162 = vector.load %arg11[%c0_64, %c0_65] : memref<8x1xf32, #tpu.memory_space<vmem>>, vector<8x1xf32>
      tpu.vector_store %arg11[%c0_64, %c0_65], %161 {strides = array<i32>} : memref<8x1xf32, #tpu.memory_space<vmem>>, vector<8x1xf32>,
    } else {
    }
    %c0 = arith.constant 0 : index
    %c0_1 = arith.constant 0 : index
    %3 = vector.load %arg8[%c0, %c0_1] : memref<8x64xf32, #tpu.memory_space<vmem>>, vector<8x64xf32>
    %4 = arith.truncf %3 : vector<8x64xf32> to vector<8x64xbf16>
    %c0_2 = arith.constant 0 : index
    %c0_3 = arith.constant 0 : index
    %5 = vector.load %arg4[%c0_2, %c0_3] : memref<64x128xbf16, #tpu.memory_space<vmem>>, vector<64x128xbf16>
    %cst = arith.constant dense<0.000000e+00> : vector<8x128xf32>
    %6 = tpu.matmul %4, %5, %cst {dimension_numbers = #tpu.dot_dimension_numbers<[1], [0], [0], [1], [0, 0, 1, 1], [], []>} : vector<8x64xbf16>, vector<64x128xbf16>, vector<8x128xf32> -> vector<8x128xf32>
    %c0_4 = arith.constant 0 : index
    %c0_5 = arith.constant 0 : index
    %7 = vector.load %arg5[%c0_4, %c0_5] : memref<1x128xf32, #tpu.memory_space<vmem>>, vector<1x128xf32>
    %8 = vector.broadcast %7 : vector<1x128xf32> to vector<8x128xf32>
    %9 = arith.addf %6, %8 : vector<8x128xf32>
    %c0_6 = arith.constant 0 : index
    %c0_7 = arith.constant 0 : index
    %10 = vector.load %arg9[%c0_6, %c0_7] : memref<8x1xf32, #tpu.memory_space<vmem>>, vector<8x1xf32>
    %cst_8 = arith.constant dense<0xFF800000> : vector<8xf32>
    %11 = vector.multi_reduction <maximumf>, %9, %cst_8 [1] : vector<8x128xf32> to vector<8xf32>
    %12 = vector.shape_cast %11 : vector<8xf32> to vector<8x1xf32>
    %13 = arith.maximumf %10, %12 : vector<8x1xf32>
    %14 = arith.subf %10, %13 : vector<8x1xf32>
    %15 = math.exp %14 : vector<8x1xf32>
    %c0_9 = arith.constant 0 : index
    %c0_10 = arith.constant 0 : index
    %16 = vector.load %arg10[%c0_9, %c0_10] : memref<8x1xf32, #tpu.memory_space<vmem>>, vector<8x1xf32>
    %17 = arith.mulf %15, %16 : vector<8x1xf32>
    %18 = vector.broadcast %13 : vector<8x1xf32> to vector<8x128xf32>
    %19 = arith.subf %9, %18 : vector<8x128xf32>
    %20 = math.exp %19 : vector<8x128xf32>
    %cst_11 = arith.constant dense<0.000000e+00> : vector<8xf32>
    %21 = vector.multi_reduction <add>, %20, %cst_11 [1] : vector<8x128xf32> to vector<8xf32>
    %22 = vector.shape_cast %21 : vector<8xf32> to vector<8x1xf32>
    %23 = arith.addf %17, %22 : vector<8x1xf32>
    %c0_12 = arith.constant 0 : index
    %c0_13 = arith.constant 0 : index
    %24 = vector.load %arg10[%c0_12, %c0_13] : memref<8x1xf32, #tpu.memory_space<vmem>>, vector<8x1xf32>
    tpu.vector_store %arg10[%c0_12, %c0_13], %23 {strides = array<i32>} : memref<8x1xf32, #tpu.memory_space<vmem>>, vector<8x1xf32>,
    %c0_14 = arith.constant 0 : index
    %c0_15 = arith.constant 0 : index
    %25 = vector.load %arg9[%c0_14, %c0_15] : memref<8x1xf32, #tpu.memory_space<vmem>>, vector<8x1xf32>
    tpu.vector_store %arg9[%c0_14, %c0_15], %13 {strides = array<i32>} : memref<8x1xf32, #tpu.memory_space<vmem>>, vector<8x1xf32>,
    %c0_16 = arith.constant 0 : index
    %c0_17 = arith.constant 0 : index
    %26 = vector.load %arg6[%c0_16, %c0_17] : memref<8x8xi32, #tpu.memory_space<vmem>>, vector<8x8xi32>
    %c128_i32 = arith.constant 128 : i32
    %27 = arith.muli %arg0, %c128_i32 : i32
    %28 = tpu.iota {dimensions = array<i32: 1>} : vector<8x128xi32>
    %29 = vector.broadcast %27 : i32 to vector<8x128xi32>
    %30 = arith.addi %29, %28 : vector<8x128xi32>
    %cst_18 = arith.constant 0.000000e+00 : f32
    %31 = vector.broadcast %cst_18 : f32 to vector<8x1xf32>
    %32 = vector.extract_strided_slice %26 {offsets = [0, 0], sizes = [8, 1], strides = [1, 1]} : vector<8x8xi32> to vector<8x1xi32>
    %33 = vector.broadcast %32 : vector<8x1xi32> to vector<8x128xi32>
    %34 = arith.cmpi eq, %30, %33 : vector<8x128xi32>
    %c0_i32_19 = arith.constant 0 : i32
    %35 = vector.broadcast %c0_i32_19 : i32 to vector<8x1xi32>
    %36 = arith.cmpi ne, %32, %35 : vector<8x1xi32>
    %37 = vector.broadcast %36 : vector<8x1xi1> to vector<8x128xi1>
    %38 = arith.andi %34, %37 : vector<8x128xi1>
    %39 = arith.extui %38 : vector<8x128xi1> to vector<8x128xi32>
    %40 = arith.sitofp %39 : vector<8x128xi32> to vector<8x128xf32>
    %41 = arith.mulf %40, %9 : vector<8x128xf32>
    %cst_20 = arith.constant dense<0.000000e+00> : vector<8xf32>
    %42 = vector.multi_reduction <add>, %41, %cst_20 [1] : vector<8x128xf32> to vector<8xf32>
    %43 = vector.shape_cast %42 : vector<8xf32> to vector<8x1xf32>
    %44 = arith.addf %31, %43 : vector<8x1xf32>
    %45 = vector.extract_strided_slice %26 {offsets = [0, 1], sizes = [8, 1], strides = [1, 1]} : vector<8x8xi32> to vector<8x1xi32>
    %46 = vector.broadcast %45 : vector<8x1xi32> to vector<8x128xi32>
    %47 = arith.cmpi eq, %30, %46 : vector<8x128xi32>
    %c0_i32_21 = arith.constant 0 : i32
    %48 = vector.broadcast %c0_i32_21 : i32 to vector<8x1xi32>
    %49 = arith.cmpi ne, %45, %48 : vector<8x1xi32>
    %50 = vector.broadcast %49 : vector<8x1xi1> to vector<8x128xi1>
    %51 = arith.andi %47, %50 : vector<8x128xi1>
    %52 = arith.extui %51 : vector<8x128xi1> to vector<8x128xi32>
    %53 = arith.sitofp %52 : vector<8x128xi32> to vector<8x128xf32>
    %54 = arith.mulf %53, %9 : vector<8x128xf32>
    %cst_22 = arith.constant dense<0.000000e+00> : vector<8xf32>
    %55 = vector.multi_reduction <add>, %54, %cst_22 [1] : vector<8x128xf32> to vector<8xf32>
    %56 = vector.shape_cast %55 : vector<8xf32> to vector<8x1xf32>
    %57 = arith.addf %44, %56 : vector<8x1xf32>
    %58 = vector.extract_strided_slice %26 {offsets = [0, 2], sizes = [8, 1], strides = [1, 1]} : vector<8x8xi32> to vector<8x1xi32>
    %59 = vector.broadcast %58 : vector<8x1xi32> to vector<8x128xi32>
    %60 = arith.cmpi eq, %30, %59 : vector<8x128xi32>
    %c0_i32_23 = arith.constant 0 : i32
    %61 = vector.broadcast %c0_i32_23 : i32 to vector<8x1xi32>
    %62 = arith.cmpi ne, %58, %61 : vector<8x1xi32>
    %63 = vector.broadcast %62 : vector<8x1xi1> to vector<8x128xi1>
    %64 = arith.andi %60, %63 : vector<8x128xi1>
    %65 = arith.extui %64 : vector<8x128xi1> to vector<8x128xi32>
    %66 = arith.sitofp %65 : vector<8x128xi32> to vector<8x128xf32>
    %67 = arith.mulf %66, %9 : vector<8x128xf32>
    %cst_24 = arith.constant dense<0.000000e+00> : vector<8xf32>
    %68 = vector.multi_reduction <add>, %67, %cst_24 [1] : vector<8x128xf32> to vector<8xf32>
    %69 = vector.shape_cast %68 : vector<8xf32> to vector<8x1xf32>
    %70 = arith.addf %57, %69 : vector<8x1xf32>
    %71 = vector.extract_strided_slice %26 {offsets = [0, 3], sizes = [8, 1], strides = [1, 1]} : vector<8x8xi32> to vector<8x1xi32>
    %72 = vector.broadcast %71 : vector<8x1xi32> to vector<8x128xi32>
    %73 = arith.cmpi eq, %30, %72 : vector<8x128xi32>
    %c0_i32_25 = arith.constant 0 : i32
    %74 = vector.broadcast %c0_i32_25 : i32 to vector<8x1xi32>
    %75 = arith.cmpi ne, %71, %74 : vector<8x1xi32>
    %76 = vector.broadcast %75 : vector<8x1xi1> to vector<8x128xi1>
    %77 = arith.andi %73, %76 : vector<8x128xi1>
    %78 = arith.extui %77 : vector<8x128xi1> to vector<8x128xi32>
    %79 = arith.sitofp %78 : vector<8x128xi32> to vector<8x128xf32>
    %80 = arith.mulf %79, %9 : vector<8x128xf32>
    %cst_26 = arith.constant dense<0.000000e+00> : vector<8xf32>
    %81 = vector.multi_reduction <add>, %80, %cst_26 [1] : vector<8x128xf32> to vector<8xf32>
    %82 = vector.shape_cast %81 : vector<8xf32> to vector<8x1xf32>
    %83 = arith.addf %70, %82 : vector<8x1xf32>
    %84 = vector.extract_strided_slice %26 {offsets = [0, 4], sizes = [8, 1], strides = [1, 1]} : vector<8x8xi32> to vector<8x1xi32>
    %85 = vector.broadcast %84 : vector<8x1xi32> to vector<8x128xi32>
    %86 = arith.cmpi eq, %30, %85 : vector<8x128xi32>
    %c0_i32_27 = arith.constant 0 : i32
    %87 = vector.broadcast %c0_i32_27 : i32 to vector<8x1xi32>
    %88 = arith.cmpi ne, %84, %87 : vector<8x1xi32>
    %89 = vector.broadcast %88 : vector<8x1xi1> to vector<8x128xi1>
    %90 = arith.andi %86, %89 : vector<8x128xi1>
    %91 = arith.extui %90 : vector<8x128xi1> to vector<8x128xi32>
    %92 = arith.sitofp %91 : vector<8x128xi32> to vector<8x128xf32>
    %93 = arith.mulf %92, %9 : vector<8x128xf32>
    %cst_28 = arith.constant dense<0.000000e+00> : vector<8xf32>
    %94 = vector.multi_reduction <add>, %93, %cst_28 [1] : vector<8x128xf32> to vector<8xf32>
    %95 = vector.shape_cast %94 : vector<8xf32> to vector<8x1xf32>
    %96 = arith.addf %83, %95 : vector<8x1xf32>
    %97 = vector.extract_strided_slice %26 {offsets = [0, 5], sizes = [8, 1], strides = [1, 1]} : vector<8x8xi32> to vector<8x1xi32>
    %98 = vector.broadcast %97 : vector<8x1xi32> to vector<8x128xi32>
    %99 = arith.cmpi eq, %30, %98 : vector<8x128xi32>
    %c0_i32_29 = arith.constant 0 : i32
    %100 = vector.broadcast %c0_i32_29 : i32 to vector<8x1xi32>
    %101 = arith.cmpi ne, %97, %100 : vector<8x1xi32>
    %102 = vector.broadcast %101 : vector<8x1xi1> to vector<8x128xi1>
    %103 = arith.andi %99, %102 : vector<8x128xi1>
    %104 = arith.extui %103 : vector<8x128xi1> to vector<8x128xi32>
    %105 = arith.sitofp %104 : vector<8x128xi32> to vector<8x128xf32>
    %106 = arith.mulf %105, %9 : vector<8x128xf32>
    %cst_30 = arith.constant dense<0.000000e+00> : vector<8xf32>
    %107 = vector.multi_reduction <add>, %106, %cst_30 [1] : vector<8x128xf32> to vector<8xf32>
    %108 = vector.shape_cast %107 : vector<8xf32> to vector<8x1xf32>
    %109 = arith.addf %96, %108 : vector<8x1xf32>
    %110 = vector.extract_strided_slice %26 {offsets = [0, 6], sizes = [8, 1], strides = [1, 1]} : vector<8x8xi32> to vector<8x1xi32>
    %111 = vector.broadcast %110 : vector<8x1xi32> to vector<8x128xi32>
    %112 = arith.cmpi eq, %30, %111 : vector<8x128xi32>
    %c0_i32_31 = arith.constant 0 : i32
    %113 = vector.broadcast %c0_i32_31 : i32 to vector<8x1xi32>
    %114 = arith.cmpi ne, %110, %113 : vector<8x1xi32>
    %115 = vector.broadcast %114 : vector<8x1xi1> to vector<8x128xi1>
    %116 = arith.andi %112, %115 : vector<8x128xi1>
    %117 = arith.extui %116 : vector<8x128xi1> to vector<8x128xi32>
    %118 = arith.sitofp %117 : vector<8x128xi32> to vector<8x128xf32>
    %119 = arith.mulf %118, %9 : vector<8x128xf32>
    %cst_32 = arith.constant dense<0.000000e+00> : vector<8xf32>
    %120 = vector.multi_reduction <add>, %119, %cst_32 [1] : vector<8x128xf32> to vector<8xf32>
    %121 = vector.shape_cast %120 : vector<8xf32> to vector<8x1xf32>
    %122 = arith.addf %109, %121 : vector<8x1xf32>
    %123 = vector.extract_strided_slice %26 {offsets = [0, 7], sizes = [8, 1], strides = [1, 1]} : vector<8x8xi32> to vector<8x1xi32>
    %124 = vector.broadcast %123 : vector<8x1xi32> to vector<8x128xi32>
    %125 = arith.cmpi eq, %30, %124 : vector<8x128xi32>
    %c0_i32_33 = arith.constant 0 : i32
    %126 = vector.broadcast %c0_i32_33 : i32 to vector<8x1xi32>
    %127 = arith.cmpi ne, %123, %126 : vector<8x1xi32>
    %128 = vector.broadcast %127 : vector<8x1xi1> to vector<8x128xi1>
    %129 = arith.andi %125, %128 : vector<8x128xi1>
    %130 = arith.extui %129 : vector<8x128xi1> to vector<8x128xi32>
    %131 = arith.sitofp %130 : vector<8x128xi32> to vector<8x128xf32>
    %132 = arith.mulf %131, %9 : vector<8x128xf32>
    %cst_34 = arith.constant dense<0.000000e+00> : vector<8xf32>
    %133 = vector.multi_reduction <add>, %132, %cst_34 [1] : vector<8x128xf32> to vector<8xf32>
    %134 = vector.shape_cast %133 : vector<8xf32> to vector<8x1xf32>
    %135 = arith.addf %122, %134 : vector<8x1xf32>
    %c0_35 = arith.constant 0 : index
    %c0_36 = arith.constant 0 : index
    %136 = vector.load %arg11[%c0_35, %c0_36] : memref<8x1xf32, #tpu.memory_space<vmem>>, vector<8x1xf32>
    %137 = arith.addf %136, %135 : vector<8x1xf32>
    %c0_37 = arith.constant 0 : index
    %c0_38 = arith.constant 0 : index
    %138 = vector.load %arg11[%c0_37, %c0_38] : memref<8x1xf32, #tpu.memory_space<vmem>>, vector<8x1xf32>
    tpu.vector_store %arg11[%c0_37, %c0_38], %137 {strides = array<i32>} : memref<8x1xf32, #tpu.memory_space<vmem>>, vector<8x1xf32>,
    %c2_i32 = arith.constant 2 : i32
    %139 = arith.cmpi eq, %arg0, %c2_i32 : i32
    %140 = arith.extui %139 : i1 to i32
    %c0_i32_39 = arith.constant 0 : i32
    %141 = arith.cmpi ne, %140, %c0_i32_39 : i32
    scf.if %141 {
      %c0_40 = arith.constant 0 : index
      %c0_41 = arith.constant 0 : index
      %142 = vector.load %arg9[%c0_40, %c0_41] : memref<8x1xf32, #tpu.memory_space<vmem>>, vector<8x1xf32>
      %c0_42 = arith.constant 0 : index
      %c0_43 = arith.constant 0 : index
      %143 = vector.load %arg10[%c0_42, %c0_43] : memref<8x1xf32, #tpu.memory_space<vmem>>, vector<8x1xf32>
      %144 = math.log %143 : vector<8x1xf32>
      %145 = arith.addf %142, %144 : vector<8x1xf32>
      %c0_44 = arith.constant 0 : index
      %c0_45 = arith.constant 0 : index
      %146 = vector.load %arg6[%c0_44, %c0_45] : memref<8x8xi32, #tpu.memory_space<vmem>>, vector<8x8xi32>
      %c0_i32_46 = arith.constant 0 : i32
      %147 = vector.broadcast %c0_i32_46 : i32 to vector<8x8xi32>
      %148 = arith.cmpi ne, %146, %147 : vector<8x8xi32>
      %149 = arith.extui %148 : vector<8x8xi1> to vector<8x8xi32>
      %150 = arith.sitofp %149 : vector<8x8xi32> to vector<8x8xf32>
      %cst_47 = arith.constant dense<0.000000e+00> : vector<8xf32>
      %151 = vector.multi_reduction <add>, %150, %cst_47 [1] : vector<8x8xf32> to vector<8xf32>
      %152 = vector.shape_cast %151 : vector<8xf32> to vector<8x1xf32>
      %153 = arith.mulf %152, %145 : vector<8x1xf32>
      %c0_48 = arith.constant 0 : index
      %c0_49 = arith.constant 0 : index
      %154 = vector.load %arg11[%c0_48, %c0_49] : memref<8x1xf32, #tpu.memory_space<vmem>>, vector<8x1xf32>
      %155 = arith.subf %153, %154 : vector<8x1xf32>
      %156 = vector.shape_cast %155 : vector<8x1xf32> to vector<1x8x1xf32>
      %cst_50 = arith.constant dense<0.000000e+00> : vector<1xf32>
      %157 = vector.multi_reduction <add>, %156, %cst_50 [1, 2] : vector<1x8x1xf32> to vector<1xf32>
      %158 = vector.shape_cast %157 : vector<1xf32> to vector<1x1x1xf32>
      %159 = vector.extract %158[0, 0, 0] : f32 from vector<1x1x1xf32>
      %c0_51 = arith.constant 0 : index
      %c0_52 = arith.constant 0 : index
      %160 = memref.load %arg7[%c0_51, %c0_52] : memref<1x1xf32, #tpu.memory_space<smem>>
      memref.store %159, %arg7[%c0_51, %c0_52] : memref<1x1xf32, #tpu.memory_space<smem>>
    } else {
    }
    return
  }
  func.func @transform_0(%arg0: i32) -> (i32, i32, i32) {
    %c0_i32 = arith.constant 0 : i32
    %c0_i32_0 = arith.constant 0 : i32
    %c0_i32_1 = arith.constant 0 : i32
    %c0_i32_2 = arith.constant 0 : i32
    return %c0_i32, %c0_i32_0, %c0_i32_1 : i32, i32, i32
  }
  func.func @transform_1(%arg0: i32) -> (i32, i32, i32) {
    %c0_i32 = arith.constant 0 : i32
    %c0_i32_0 = arith.constant 0 : i32
    %c0_i32_1 = arith.constant 0 : i32
    %c0_i32_2 = arith.constant 0 : i32
    return %c0_i32, %c0_i32_0, %c0_i32_1 : i32, i32, i32
  }
  func.func @transform_2(%arg0: i32) -> (i32, i32) {
    %c0_i32 = arith.constant 0 : i32
    %c0_i32_0 = arith.constant 0 : i32
    %c0_i32_1 = arith.constant 0 : i32
    return %c0_i32, %c0_i32_0 : i32, i32
  }
  func.func @transform_3(%arg0: i32) -> (i32, i32) {
    %c0_i32 = arith.constant 0 : i32
    %c0_i32_0 = arith.constant 0 : i32
    return %c0_i32, %arg0 : i32, i32
  }
  func.func @transform_4(%arg0: i32) -> (i32, i32) {
    %c0_i32 = arith.constant 0 : i32
    %c0_i32_0 = arith.constant 0 : i32
    return %c0_i32, %arg0 : i32, i32
  }
  func.func @transform_5(%arg0: i32) -> (i32, i32) {
    %c0_i32 = arith.constant 0 : i32
    %c0_i32_0 = arith.constant 0 : i32
    %c0_i32_1 = arith.constant 0 : i32
    return %c0_i32, %c0_i32_0 : i32, i32
  }
  func.func @transform_6(%arg0: i32) -> (i32, i32) {
    %c0_i32 = arith.constant 0 : i32
    %c0_i32_0 = arith.constant 0 : i32
    %c0_i32_1 = arith.constant 0 : i32
    return %c0_i32, %c0_i32_0 : i32, i32
  }
}

</mosaic_0001>

<bundles_post_ra>
// kernel: tpu_custom_call.1
= control target key start
LH: loop header
LB: loop body
LE: loop exit
PB: predicated region body
PF: predicated region fallthrough
CT: control target
= control target key end

     0   :  { %s1470_s0 = inlined_call_operand.hbm [shape: bf16[2,8,32], index: 0, kind: input, shape index: {}]   ;;  %s1471_s1 = inlined_call_operand.hbm [shape: bf16[2,32,64], index: 1, kind: input, shape index: {}]   ;;  %s1472_s2 = inlined_call_operand.hbm [shape: f32[1,64], index: 2, kind: input, shape index: {}]   ;;  %s1473_s3 = inlined_call_operand.hbm [shape: bf16[64,384], index: 3, kind: input, shape index: {}]   ;;  %s1474_s4 = inlined_call_operand.vmem [shape: f32[1,384], index: 4, kind: input, shape index: {}]   ;;  %s1475_s5 = inlined_call_operand.hbm [shape: s32[8,8], index: 5, kind: input, shape index: {}]   ;;  %s1476_s6 = inlined_call_operand.hbm [shape: f32[1,1], index: 6, kind: output, shape index: {}]  }
   0x1   :  { %1477 = sst [smem:[#allocation21_spill]] %s1470_s0 }
   0x2   :  { %1478 = sst [smem:[#allocation22_spill]] %s1471_s1 }
   0x3   :  { %1479 = sst [smem:[#allocation23_spill]] %s1472_s2 }
   0x4   :  { %11 = vsyncpa [#allocation7], 0 }
   0x5   :  { %12 = vsyncpa [#allocation10], 0 }
   0x6   :  { %13 = vsyncpa [#allocation13], 0 }
   0x7   :  { %15 = vsyncpa [#allocation13 + $0x1], 0 }
   0x8   :  { %16 = vsyncpa [#allocation8], 0  ;;  %s1240_s21 = smov 0   ;;  %s1242_s22 = smov 0  }
   0x9   :  { %s1244_s23 = smov 0   ;;  %s1246_s24 = smov 0  }
   0xa LB: > { %s1259_s25 = sadd.s32 4294967295, %s1183_s24   ;;  %s1262_s26 = sadd.s32 1, %s1183_s24   ;;  %s1183_s24 = sphi %s1246_s24, %s1491_s24   ;;  %s1179_s23 = sphi %s1244_s23, %s1490_s23   ;;  %s1175_s22 = sphi %s1242_s22, %s1489_s22   ;;  %s1171_s21 = sphi %s1240_s21, %s1488_s21  }
   0xb   : > { %s89_s27 = ssub.s32 %s1183_s24, %s1262_s26  ;;  %s92_s28 = sadd.s32 1, %s1179_s23 }
   0xc   : > { %p90_p0 = scmp.eq.s32.totalorder %s89_s27, 0  ;;  %p99_p1 = scmp.ne.s32.totalorder %s1179_s23, %s1175_s22 }
   0xd   : > { %p100_p2 = scmp.eq.s32.totalorder %s1183_s24, 0  ;;  %p105_p3 = scmp.ne.s32.totalorder %s1175_s22, %s1171_s21 }
   0xe   : > { %s1272_s29 = scalar_select %p90_p0, %s1179_s23, %s92_s28  }
   0xf   : > { %p1274_p4 = por %p100_p2, %p99_p1  ;;  %p106_p5 = scmp.eq.s32.totalorder %s1259_s25, 0 }
  0x10   : > { %p769_p6 = scmp.ge.s32.totalorder %s1183_s24, 1  ;;  %p184_p7 = scmp.lt.s32.totalorder %s1183_s24, 4 }
  0x11   : > { %p1283_p8 = por %p106_p5, %p105_p3  ;;  %p770_p9 = scmp.ne.s32.totalorder %s1259_s25, 0 }
  0x12   : > { %p1288_p10 = pnand %p769_p6, %p184_p7  ;;  %s1483_s1 = sld [smem:[#allocation22_spill]] }
  0x13   : > { %s1185_s13 = smov [#allocation9]   ;;  %p887_p13 = scmp.lt.s32.totalorder %s1183_s24, 3 }
  0x14   : > { %p866_p11 = pneg %p1288_p10  ;;  %s211_s14 = sshll.u32 %s1185_s13, 4  ;;  %s212_s14 = int_to_ptr.vmem [resolvable:$true] %s211_s14 }
  0x15   : > { %s236_s17 = sshll.u32 %s1475_s5, 4  ;;  %s1186_s18 = smov 64   ;;  %s237_s17 = int_to_ptr.hbm [resolvable:$true] %s236_s17 }
  0x16   : > { %p1299_p12 = pnand %p866_p11, %p106_p5  ;;  %s1187_s19 = smov 4  }
  0x17   : > { %p1314_p0 = pnand %p887_p13, %p1274_p4  ;;  %s1486_s0 = sld [smem:[#allocation21_spill]] }
  0x18   : > { %s209_s11 = sshll.u32 %s1483_s1, 4  ;;  %s1188_s9 = smov [#allocation14]   ;;  %s210_s11 = int_to_ptr.hbm [resolvable:$true] %s209_s11 }
  0x19   : > { %872 = dma.hbm_to_vmem [thread:$0]  (!%p1299_p12), %s210_s11, 512, %s212_s14, [#allocation10], %s1186_s18, %s1186_s18, %s1187_s19  }
  0x1a   : > { %s238_s10 = sshll.u32 %s1188_s9, 4  ;;  %s1487_s2 = sld [smem:[#allocation23_spill]]  ;;  %s239_s10 = int_to_ptr.vmem [resolvable:$true] %s238_s10 }
  0x1b   : > { %878 = dma.hbm_to_vmem [thread:$0]  (!%p1299_p12), %s237_s17, 128, %s239_s10, [#allocation13]  }
  0x1c   : > { %s1189_s14 = smov [#allocation6]   ;;  %s1190_s16 = smov [#allocation11]  }
  0x1d   : > { %s195_s28 = sshll.u32 %s1486_s0, 4  ;;  %s197_s15 = sshll.u32 %s1189_s14, 4  ;;  %s196_s28 = int_to_ptr.hbm [resolvable:$true] %s195_s28  ;;  %s198_s15 = int_to_ptr.vmem [resolvable:$true] %s197_s15 }
  0x1e   : > { %869 = dma.hbm_to_vmem [thread:$0]  (!%p1299_p12), %s196_s28, 128, %s198_s15, [#allocation7], %s1186_s18, %s1186_s18, %s1187_s19  }
  0x1f   : > { %s226_s21 = sshll.u32 %s1190_s16, 4  ;;  %s249_s27 = sand.u32 1, %s1183_s24   ;;  %s227_s21 = int_to_ptr.vmem [resolvable:$true] %s226_s21 }
  0x20   : > { %s224_s13 = sshll.u32 %s1487_s2, 4  ;;  %s251_s17 = sand.u32 1, %s1179_s23   ;;  %s225_s13 = int_to_ptr.hbm [resolvable:$true] %s224_s13 }
  0x21   : > { %875 = dma.hbm_to_vmem [thread:$0]  (!%p1299_p12), %s225_s13, 16, %s227_s21, [#allocation10]  }
  0x22   : > { %s776_s9 = sshll.u32 %s1183_s24, 2  ;;  %s775_s10 = sshll.u32 %s251_s17, 5 }
  0x23   : > { %s257_s14 = scalar_lea.hbm %s1473_s3, %s776_s9  ;;  %s253_s1 = scalar_lea.vmem [#allocation12], %s775_s10 }
  0x24   : > { %s258_s0 = sshll.u32 %s257_s14, 4  ;;  %s260_s2 = sshll.u32 %s253_s1, 4  ;;  %s259_s0 = int_to_ptr.hbm [resolvable:$true] %s258_s0  ;;  %s261_s2 = int_to_ptr.vmem [resolvable:$true] %s260_s2 }
  0x25   : > { %s250_s28 = scalar_lea.sflag [#allocation13], %s249_s27  ;;  %s1089_s15 = sshra.s32 %s259_s0, 4  ;;  %s1090_s15 = int_to_ptr.hbm [resolvable:$true] %s1089_s15 }
  0x26   : > { %s1091_s16 = scalar_lea.hbm %s1090_s15, 32  ;;  %p1093_p2 = pneg %p1314_p0 }
  0x27   : > { %p1092_p1 = scmp.ne.s32.totalorder %s1090_s15, %s1091_s16  ;;  %s1096_s13 = scalar_lea.hbm %s1473_s3, 96 }
  0x28   : > { %p1097_p6 = scmp.lt.s32.totalorder %s1090_s15, %s1473_s3  ;;  %p1098_p7 = scmp.lt.s32.totalorder %s1096_s13, %s1091_s16 }
  0x29   : > { %p1094_p3 = pnand %p1093_p2, %p1092_p1 }
  0x2a   : > { %p1099_p11 = por %p1098_p7, %p1097_p6 }
  0x2b   : > { %p1095_p4 = pneg %p1094_p3 }
  0x2d   : > { %p1100_p12 = pnand %p1099_p11, %p1095_p4 }
  0x2f   : > { %1103 = shalt.err (!%p1100_p12)
}
  0x30   : > { %s1191_s1 = smov 192   ;;  %278 = sbr.rel (%p1288_p10) target bundleno = 1037 (0x40d), region = 44 }
  0x31   : > { %882 = dma.hbm_to_vmem [thread:$0]  (!%p1314_p0), %s259_s0, 512, %s261_s2, %s250_s28, %s1191_s1, %s1186_s18, %s1187_s19  }
  0x35   : > { %1150 = dma.done.wait (%p106_p5), [#allocation7], 128  }
  0x36   : > { %1152 = vsyncadd (%p106_p5), [#allocation7], 4294967168 }
  0x37   : > { %1154 = dma.done.wait (%p106_p5), [#allocation10], 528  }
  0x38   : > { %1156 = vsyncadd (%p106_p5), [#allocation10], 4294966768  ;;  %s295_s20 = sand.u32 1, %s1259_s25   ;;  %s297_s0 = sand.u32 1, %s1175_s22  }
  0x39   : > { %s781_s2 = sshll.u32 %s297_s0, 5  ;;  %s296_s8 = scalar_lea.sflag [#allocation13], %s295_s20 }
  0x3a   : > { %s1363_s18 = scalar_lea.vmem [#allocation12], %s781_s2 }
  0x3b   : > { %1158 = dma.done.wait (%p1283_p8), %s296_s8, 512  }
  0x3c   : > { %1160 = vsyncadd (%p1283_p8), %s296_s8, 4294966784 }
  0x3d   : > { %1162 = dma.done.wait (%p106_p5), [#allocation13], 128  }
  0x3e   : > { %1164 = vsyncadd (%p106_p5), [#allocation13], 4294967168  ;;  %p332_p10 = scmp.lt.s32.totalorder %s1259_s25, 2  ;;  %339 = sbr.rel (%p770_p9) target bundleno = 209 (0xd1), region = 68 }
  0x40   : > { %s1375_s19 = scalar_select %p332_p10, %s1259_s25, 2 }
  0x42   : > { %s334_s10 = scalar_lea.vmem %s1474_s4, %s1375_s19 }
  0x43   : > { %v837_v0 = vld [vmem:[#allocation9 + $0x18] sm:$0xff]  ;;  %v835_v1 = vld [vmem:[#allocation9 + $0x8] sm:$0xff]  ;;  %v836_v2 = vld [vmem:[#allocation9 + $0x10] sm:$0xff]  ;;  %vm364_vm0 = vcmask 261120   ;;  %vm416_vm1 = vcmask 7168   ;;  %v1192_v6 = vmov -inf  }
  0x44   : > { %374 = vmatpush.bf16.msra.mxu0 %v837_v0  ;;  %402 = vmatpush.bf16.msra.mxu1 %v835_v1  ;;  %v834_v3 = vld [vmem:[#allocation9] sm:$0xff]  ;;  %v346_v4 = vld [vmem:[#allocation6 + $0x4] sm:$0xf]  ;;  %v340_v5 = vld [vmem:[#allocation6] sm:$0xf]  ;;  %417 = vst.msk [vmem:[#allocation3] sm:$0xff] %vm416_vm1, %v1192_v6 }
  0x45   : > { %v1193_v7 = vmov 0.0   ;;  %v946_v8 = vld [vmem:[#allocation11] ss:$0 sm:$0xff]  ;;  %vm414_vm2 = vcmask 523264  }
  0x46   : > { %418 = vst.msk [vmem:[#allocation4] sm:$0xff] %vm416_vm1, %v1193_v7 }
  0x47   : > { %419 = vst.msk [vmem:[#allocation5] sm:$0xff] %vm416_vm1, %v1193_v7 }
  0x48   : > { %375 = vmatpush.bf16.msra.mxu0 %v836_v2  ;;  %403 = vmatpush.bf16.msra.mxu1 %v834_v3 }
  0x4b   : > { %792 = vmatmul.msk.bf16.vlgmr.msra.gmra.mxu0 %vm364_vm0, %v346_v4  ;;  %801 = vmatmul.msk.bf16.vlgmr.msra.gmra.mxu1 %vm364_vm0, %v340_v5 }
  0xc8   : > { %v377_v9 = vpop.f32.mrf.mxu0  ;;  %v405_v10 = vpop.f32.mrf.mxu1 }
  0xc9   : > { %v406_v11 = vadd.f32 %v405_v10, %v377_v9 }
  0xcb   : > { %v413_v12 = vadd.f32 %v946_v8, %v406_v11 }
  0xcd   : > { %415 = vst.msk [vmem:[#allocation2] sm:$0xff] %vm414_vm2, %v413_v12 }
  0xd0   : > { %v379_v13 = vpop.f32.mrf.mxu0  ;;  %v407_v14 = vpop.f32.mrf.mxu1 }
  0xd1 PF: > { %v1383_v15 = vld [vmem:[#allocation14] sm:$0xff]  ;;  %v841_v16 = vld [vmem:[%s1363_s18 + $0x18] sm:$0xff]  ;;  %v1194_v17 = vmov 0   ;;  %v840_v19 = vld [vmem:[%s1363_s18 + $0x10] sm:$0xff]  ;;  %v1195_v20 = vmov 4   ;;  %v1196_v22 = vmov 1   ;;  %v500_v31 = vlaneseq }
  0xd2   : > { %vm508_vm3 = vcmp.ne.s32.totalorder %v1383_v15, 0  ;;  %947 = vset.pattern.permute.xlu1 %v1194_v17  ;;  %949 = vset.pattern.permute.xlu2 %v1194_v17  ;;  %v839_v21 = vld [vmem:[%s1363_s18 + $0x8] sm:$0xff]  ;;  %v838_v23 = vld [vmem:[%s1363_s18] sm:$0xff]  ;;  %v1197_v25 = vmov 2   ;;  %vm458_vm4 = vcmask 523264   ;;  %v1198_v27 = vmov 3  }
  0xd3   : > { %v1390_v18 = vsel %vm508_vm3, 1, %v1194_v17  ;;  %505 = vperm.xlu1 %947, %v1383_v15   ;;  %466 = vmatpush.bf16.msra.mxu0 %v841_v16  ;;  %s819_s7 = sshll.u32 %s1259_s25, 7  ;;  %v1199_v33 = vmov 5   ;;  %v501_v34 = vand.u32 127, %v500_v31  ;;  %v962_v39 = vld [vmem:[%s334_s10] ss:$0 sm:$0xff] }
  0xd4   : > { %511 = vperm.xlu2 %949, %v1390_v18   ;;  %953 = vset.pattern.permute.xlu0 %v1195_v20  ;;  %v420_v24 = vld [vmem:[#allocation2] sm:$0xff]  ;;  %v502_v35 = vstv %s819_s7  ;;  %v1200_v43 = vmov 0.0   ;;  %v1201_v58 = vmov 6   ;;  %v1202_v59 = vmov 7   ;;  %v475_v60 = vld [vmem:[#allocation3] sm:$0xff]  ;;  %p828_p5 = scmp.ne.s32.totalorder %s1259_s25, 2 }
  0xd5   : > { %567 = vperm.xlu0 %953, %v1383_v15   ;;  %v421_v26 = vpack.c.bf16 %v420_v24, %v420_v24  ;;  %v1406_v37 = vadd.s32 %v502_v35, %v501_v34  ;;  %v626_v35 = vld [vmem:[#allocation5] sm:$0xff] }
  0xd7   : > { %467 = vmatpush.bf16.msra.mxu0 %v840_v19 }
  0xdb   : > { %948 = vset.pattern.permute.xlu1 %v1196_v22  ;;  %468 = vmatpush.bf16.msra.mxu0 %v839_v21 }
  0xdc   : > { %522 = vperm.xlu1 %948, %v1383_v15   ;;  %951 = vset.pattern.permute.xlu2 %v1197_v25 }
  0xdd   : > { %541 = vperm.xlu2 %951, %v1390_v18   ;;  %955 = vset.pattern.permute.xlu0 %v1199_v33 }
  0xdf   : > { %469 = vmatpush.bf16.msra.mxu0 %v838_v23 }
  0xe2   : > { %818 = vmatmul.msk.bf16.vlgmr.msra.gmra.mxu0 %vm458_vm4, %v421_v26  ;;  %vm495_vm4 = vcmask 7168  }
  0xe4   : > { %526 = vperm.xlu1 %948, %v1390_v18  }
  0xe5   : > { %952 = vset.pattern.permute.xlu2 %v1198_v27  ;;  %v482_v27 = vld [vmem:[#allocation4] sm:$0xff] }
  0xe6   : > { %552 = vperm.xlu2 %952, %v1383_v15  }
  0xec   : > { %950 = vset.pattern.permute.xlu1 %v1197_v25 }
  0xed   : > { %537 = vperm.xlu1 %950, %v1383_v15  }
  0xee   : > { %556 = vperm.xlu2 %952, %v1390_v18  }
  0xf5   : > { %954 = vset.pattern.permute.xlu1 %v1195_v20 }
  0xf6   : > { %571 = vperm.xlu1 %954, %v1390_v18   ;;  %956 = vset.pattern.permute.xlu2 %v1199_v33 }
 0x12e   : > { %v512_v28 = vpop.permute.xlu2 %511 }
 0x12f   : > { %vm513_vm6 = vcmp.eq.s32.totalorder %v512_v28, 1 }
 0x137   : > { %v542_v30 = vpop.permute.xlu2 %541 }
 0x138   : > { %vm543_vm8 = vcmp.eq.s32.totalorder %v542_v30, 1 }
 0x140   : > { %v553_v36 = vpop.permute.xlu2 %552 }
 0x141   : > { %vm554_vm12 = vcmp.eq.s32.totalorder %v1406_v37, %v553_v36 }
 0x145   : > { %v506_v29 = vpop.permute.xlu1 %505 }
 0x146   : > { %vm507_vm5 = vcmp.eq.s32.totalorder %v1406_v37, %v506_v29 }
 0x147   : > { %vm514_vm7 = vmand %vm507_vm5, %vm513_vm6  ;;  %v568_v49 = vpop.permute.xlu0 %567 }
 0x148   : > { %v557_v40 = vpop.permute.xlu2 %556  ;;  %v820_v44 = vsel %vm514_vm7, 1.0, %v1200_v43  ;;  %vm569_vm1 = vcmp.eq.s32.totalorder %v1406_v37, %v568_v49 }
 0x149   : > { %vm558_vm14 = vcmp.eq.s32.totalorder %v557_v40, 1 }
 0x14a   : > { %vm559_vm0 = vmand %vm554_vm12, %vm558_vm14 }
 0x14b   : > { %v823_v52 = vsel %vm559_vm0, 1.0, %v1200_v43 }
 0x14e   : > { %v523_v32 = vpop.permute.xlu1 %522 }
 0x14f   : > { %vm524_vm9 = vcmp.eq.s32.totalorder %v1406_v37, %v523_v32 }
 0x156   : > { %v527_v38 = vpop.permute.xlu1 %526 }
 0x157   : > { %vm528_vm10 = vcmp.eq.s32.totalorder %v527_v38, 1 }
 0x158   : > { %vm529_vm15 = vmand %vm524_vm9, %vm528_vm10 }
 0x159   : > { %v821_v50 = vsel %vm529_vm15, 1.0, %v1200_v43 }
 0x15f   : > { %v538_v41 = vpop.permute.xlu1 %537  ;;  %v471_v42 = vpop.f32.mrf.mxu0 }
 0x160   : > { %vm539_vm11 = vcmp.eq.s32.totalorder %v1406_v37, %v538_v41  ;;  %v1417_v45 = vadd.f32 %v962_v39, %v471_v42 }
 0x161   : > { %vm544_vm13 = vmand %vm539_vm11, %vm543_vm8 }
 0x162   : > { %476 = vmax.xlane.f32.xlu0 %v1417_v45  ;;  %v822_v46 = vsel %vm544_vm13, 1.0, %v1200_v43  ;;  %v517_v47 = vmul.f32 %v820_v44, %v1417_v45  ;;  %v532_v54 = vmul.f32 %v821_v50, %v1417_v45  ;;  %v562_v55 = vmul.f32 %v823_v52, %v1417_v45 }
 0x163   : > { %v547_v48 = vmul.f32 %v822_v46, %v1417_v45 }
 0x164   : > { %518 = vadd.xlane.f32.xlu2 %v517_v47 }
 0x165   : > { %548 = vadd.xlane.f32.xlu1 %v547_v48 }
 0x167   : > { %v473_v51 = vpop.f32.mrf.mxu0 }
 0x168   : > { %v572_v53 = vpop.permute.xlu1 %571 }
 0x169   : > { %vm573_vm2 = vcmp.eq.s32.totalorder %v572_v53, 1 }
 0x16a   : > { %vm574_vm3 = vmand %vm569_vm1, %vm573_vm2  ;;  %533 = vadd.xlane.f32.xlu0 %v532_v54 }
 0x16b   : > { %v824_v56 = vsel %vm574_vm3, 1.0, %v1200_v43 }
 0x16c   : > { %563 = vadd.xlane.f32.xlu2 %v562_v55  ;;  %v577_v57 = vmul.f32 %v824_v56, %v1417_v45 }
 0x16e   : > { %578 = vadd.xlane.f32.xlu1 %v577_v57 }
 0x17e   : > { %582 = vperm.xlu0 %955, %v1383_v15  }
 0x184   : > { %586 = vperm.xlu2 %956, %v1390_v18  }
 0x186   : > { %957 = vset.pattern.permute.xlu0 %v1201_v58 }
 0x187   : > { %597 = vperm.xlu0 %957, %v1383_v15  }
 0x18c   : > { %958 = vset.pattern.permute.xlu2 %v1201_v58 }
 0x18d   : > { %601 = vperm.xlu2 %958, %v1390_v18  }
 0x18f   : > { %959 = vset.pattern.permute.xlu0 %v1194_v17 }
 0x195   : > { %961 = vset.pattern.permute.xlu2 %v1202_v59 }
 0x196   : > { %616 = vperm.xlu2 %961, %v1390_v18  }
 0x1d5   : > { %v477_v61 = vpop.xlane.xlu0 %476 }
 0x1d6   : > { %v478_v62 = vmax.f32 %v475_v60, %v477_v61 }
 0x1d7   : > { %v519_v63 = vpop.xlane.xlu2 %518 }
 0x1d8   : > { %v479_v0 = vsub.f32 %v475_v60, %v478_v62  ;;  %497 = vst.msk [vmem:[#allocation3] sm:$0xff] %vm495_vm4, %v478_v62  ;;  %486 = vperm.xlu0 %959, %v478_v62   ;;  %v549_v3 = vpop.xlane.xlu1 %548 }
 0x1da   : > { %v480_v24 = vmul.f32 1.442695, %v479_v0 }
 0x1dd   : > { %v534_v1 = vpop.xlane.xlu0 %533 }
 0x1de   : > { %v535_v2 = vadd.f32 %v534_v1, %v519_v63 }
 0x1df   : > { %v564_v5 = vpop.xlane.xlu2 %563 }
 0x1e0   : > { %v550_v4 = vadd.f32 %v549_v3, %v535_v2  ;;  %960 = vset.pattern.permute.xlu0 %v1202_v59 }
 0x1e1   : > { %612 = vperm.xlu0 %960, %v1383_v15   ;;  %v579_v23 = vpop.xlane.xlu1 %578 }
 0x1e2   : > { %v565_v6 = vadd.f32 %v564_v5, %v550_v4 }
 0x1e4   : > { %v580_v31 = vadd.f32 %v579_v23, %v565_v6 }
 0x1e7   : > { %v587_v7 = vpop.permute.xlu2 %586 }
 0x1e8   : > { %vm588_vm5 = vcmp.eq.s32.totalorder %v587_v7, 1 }
 0x1ef   : > { %v602_v11 = vpop.permute.xlu2 %601 }
 0x1f0   : > { %v583_v8 = vpop.permute.xlu0 %582  ;;  %vm603_vm8 = vcmp.eq.s32.totalorder %v602_v11, 1 }
 0x1f1   : > { %vm584_vm6 = vcmp.eq.s32.totalorder %v1406_v37, %v583_v8 }
 0x1f2   : > { %vm589_vm7 = vmand %vm584_vm6, %vm588_vm5 }
 0x1f3   : > { %v825_v9 = vsel %vm589_vm7, 1.0, %v1200_v43 }
 0x1f4   : > { %v592_v10 = vmul.f32 %v825_v9, %v1417_v45 }
 0x1f6   : > { %593 = vadd.xlane.f32.xlu1 %v592_v10 }
 0x1f7   : > { %v617_v18 = vpop.permute.xlu2 %616 }
 0x1f8   : > { %vm618_vm11 = vcmp.eq.s32.totalorder %v617_v18, 1 }
 0x1f9   : > { %v598_v12 = vpop.permute.xlu0 %597 }
 0x1fa   : > { %vm599_vm9 = vcmp.eq.s32.totalorder %v1406_v37, %v598_v12 }
 0x1fb   : > { %vm604_vm10 = vmand %vm599_vm9, %vm603_vm8 }
 0x1fc   : > { %v826_v13 = vsel %vm604_vm10, 1.0, %v1200_v43 }
 0x1fd   : > { %v607_v14 = vmul.f32 %v826_v13, %v1417_v45 }
 0x1ff   : > { %608 = vadd.xlane.f32.xlu2 %v607_v14 }
 0x24a   : > { %v487_v15 = vpop.permute.xlu0 %486 }
 0x24b   : > { %v489_v16 = vsub.f32 %v1417_v45, %v487_v15 }
 0x24d   : > { %v490_v17 = vmul.f32 1.442695, %v489_v16 }
 0x24f   : > { %963 = vpow2.f32 %v490_v17 }
 0x250   : > { %965 = vpow2.f32 %v480_v24 }
 0x253   : > { %v613_v19 = vpop.permute.xlu0 %612 }
 0x254   : > { %vm614_vm12 = vcmp.eq.s32.totalorder %v1406_v37, %v613_v19 }
 0x255   : > { %v964_v20 = vpop.eup %963  ;;  %vm619_vm13 = vmand %vm614_vm12, %vm618_vm11 }
 0x256   : > { %492 = vadd.xlane.f32.xlu1 %v964_v20  ;;  %v827_v21 = vsel %vm619_vm13, 1.0, %v1200_v43  ;;  %v966_v26 = vpop.eup %965 }
 0x257   : > { %v622_v22 = vmul.f32 %v827_v21, %v1417_v45  ;;  %v483_v28 = vmul.f32 %v966_v26, %v482_v27 }
 0x25e   : > { %623 = vadd.xlane.f32.xlu1 %v622_v22 }
 0x269   : > { %v594_v25 = vpop.xlane.xlu1 %593 }
 0x26a   : > { %v595_v33 = vadd.f32 %v594_v25, %v580_v31 }
 0x272   : > { %v609_v32 = vpop.xlane.xlu2 %608 }
 0x273   : > { %v610_v34 = vadd.f32 %v609_v32, %v595_v33 }
 0x2c9   : > { %v493_v29 = vpop.xlane.xlu1 %492 }
 0x2ca   : > { %v494_v30 = vadd.f32 %v493_v29, %v483_v28 }
 0x2cc   : > { %496 = vst.msk [vmem:[#allocation4] sm:$0xff] %vm495_vm4, %v494_v30 }
 0x2d1   : > { %v624_v36 = vpop.xlane.xlu1 %623 }
 0x2d2   : > { %v625_v37 = vadd.f32 %v624_v36, %v610_v34  ;;  %632 = sbr.rel (%p828_p5) target bundleno = 1031 (0x407), region = 72 }
 0x2d4   : > { %v627_v38 = vadd.f32 %v626_v35, %v625_v37 }
 0x2d6   : > { %628 = vst.msk [vmem:[#allocation5] sm:$0xff] %vm495_vm4, %v627_v38 }
 0x2d7   : > { %v638_v39 = vld [vmem:[#allocation14] sm:$0xff]  ;;  %vm642_vm14 = vcmask 64512   ;;  %v1203_v40 = vmov 0.0  }
 0x2d8   : > { %vm639_vm15 = vcmp.ne.s32.totalorder %v638_v39, 0  ;;  %v634_v43 = vld [vmem:[#allocation4] sm:$0xff]  ;;  %v633_v46 = vld [vmem:[#allocation3] sm:$0xff] }
 0x2d9   : > { %v829_v41 = vsel %vm639_vm15, 1.0, %v1203_v40  ;;  %967 = vlog2.f32 %v634_v43 }
 0x2da   : > { %v643_v42 = vsel %vm642_vm14, %v829_v41, 0.0 }
 0x2db   : > { %644 = vadd.xlane.f32.xlu0 %v643_v42 }
 0x2dd   : > { %v647_v49 = vld [vmem:[#allocation5] sm:$0xff] }
 0x2df   : > { %v968_v44 = vpop.eup %967 }
 0x2e0   : > { %v636_v45 = vmul.f32 0.6931472, %v968_v44 }
 0x2e2   : > { %v637_v47 = vadd.f32 %v636_v45, %v633_v46 }
 0x34e   : > { %v645_v48 = vpop.xlane.xlu0 %644 }
 0x34f   : > { %v646_v50 = vmul.f32 %v645_v48, %v637_v47 }
 0x351   : > { %v648_v51 = vsub.f32 %v646_v50, %v647_v49 }
 0x353   : > { %v649_v52 = vsel %vm495_vm4, %v648_v51, 0.0 }
 0x354   : > { %650 = vadd.xlane.f32.xlu0 %v649_v52 }
 0x3c7   : > { %v651_v53 = vpop.xlane.xlu0 %650 }
 0x3c8   : > { %v652_v54 = vrot.slane %v651_v53, 4 }
 0x3ca   : > { %v653_v55 = vadd.f32 %v652_v54, %v651_v53 }
 0x3cc   : > { %v654_v56 = vrot.slane %v653_v55, 2 }
 0x3ce   : > { %v655_v57 = vadd.f32 %v654_v56, %v653_v55 }
 0x3d0   : > { %v656_v58 = vrot.slane %v655_v57, 1 }
 0x3d2   : > { %v657_v59 = vadd.f32 %v656_v58, %v655_v57 }
 0x3d4   : > { %842 = vpush %v657_v59 }
 0x405   : > { %s843_s14 = spop %842 }
 0x406   : > { %660 = sst [smem:[#allocation15]] %s843_s14 }
 0x407 PF: > { %p892_p8 = scmp.eq.s32.totalorder %s1259_s25, 2  ;;  %s667_s16 = sshll.u32 %s1476_s6, 4  ;;  %s668_s16 = int_to_ptr.hbm [resolvable:$true] %s667_s16 }
 0x408   : > { %s1204_s24 = smov [#allocation15]  }
 0x409   : > { %863 = dma.smem_to_hbm (%p892_p8), %s1204_s24, 16, %s668_s16, [#allocation8]  }
 0x40a   : > { %1166 = dma.done.wait (%p892_p8), [#allocation8], 16  }
 0x40b   : > { %1168 = vsyncadd (%p892_p8), [#allocation8], 4294967280 }
 0x40c   : > { %676 = sfence }
 0x40d PF: > { %p19_p9 = scmp.ge.s32.totalorder %s1262_s26, 5   ;;  %s1488_s21 = smov %s1175_s22 }
 0x40e   : > { %s1489_s22 = smov %s1179_s23  ;;  %s1490_s23 = smov %s1272_s29 }
 0x40f   : > { %s1491_s24 = smov %s1262_s26  ;;  %21 = sbr.rel (!%p19_p9) target bundleno = 10 (0xa), region = 112 }
 0x414   :  { %682 = vsyncpa [#allocation7], 1 }
 0x415   :  { %684 = vsyncpa [#allocation7 + $0x1], 1 }
 0x416   :  { %685 = vsyncpa [#allocation10], 1 }
 0x417   :  { %686 = vsyncpa [#allocation13], 1 }
 0x418   :  { %688 = vsyncpa [#allocation13 + $0x1], 1 }
 0x419   :  { %689 = vsyncpa [#allocation8], 1 }
 0x41a   :  { %691 = vsyncpa [#allocation8 + $0x1], 1 }

</bundles_post_ra>
